<compile_context>
chip_gen: v7x
topology: tpu7x:2x2x1
jax: 0.10.0
libtpu: 0.0.40
codegen_flags: <defaults>
</compile_context>

<pallas_src>
import functools
import math

import jax
import jax.numpy as jnp
from jax import lax
from jax.experimental import pallas as pl
from jax.experimental.pallas import tpu as pltpu


def _normalized_logits(x_ref, g_ref, normalized_length):
    x = x_ref[...].astype(jnp.float32)            # (C, tn)
    g = g_ref[...].astype(jnp.float32)            # (C, tn)
    s = jnp.sum(x * x, axis=0, keepdims=True)     # (1, tn), sublane reduce
    # F.normalize(x, dim=1): x / max(||x||, 1e-12) == x * rsqrt(max(s, 1e-24))
    xn = (normalized_length * x) * lax.rsqrt(jnp.maximum(s, 1e-24))
    return xn + g


def _vq_gumbel_hard_kernel(x_ref, g_ref, cbt_ref, q_ref, *, normalized_length):
    # Hard straight-through forward value: one_hot(argmax(softmax((xn+g)/tau)))
    #   == one_hot(argmax(xn+g))  (softmax monotone, tau > 0) -> no EUP work.
    logits = _normalized_logits(x_ref, g_ref, normalized_length)   # (C, tn)
    c = logits.shape[0]
    m = jnp.max(logits, axis=0, keepdims=True)                     # (1, tn)
    iota = lax.broadcasted_iota(jnp.int32, logits.shape, 0)        # (C, tn)
    # first index achieving the max (same tie-break as argmax)
    idx = jnp.min(jnp.where(logits == m, iota, c), axis=0, keepdims=True)
    p = (iota == idx).astype(jnp.float32)                          # (C, tn)
    # q^T block: (F, C) @ (C, tn) -> (F, tn), lane-dense store.
    q = jnp.dot(cbt_ref[...], p, preferred_element_type=jnp.float32)
    q_ref[...] = q.astype(q_ref.dtype)


def _vq_gumbel_soft_kernel(x_ref, g_ref, cbt_ref, q_ref, kl_ref, *,
                           normalized_length, inv_tau, target_prob,
                           log_target, min_log_p):
    logits = _normalized_logits(x_ref, g_ref, normalized_length) * inv_tau
    m = jnp.max(logits, axis=0, keepdims=True)                     # (1, tn)
    e = jnp.exp(logits - m)
    se = jnp.sum(e, axis=0, keepdims=True)                         # (1, tn)
    p = e * pl.reciprocal(se)                     # exact reciprocal (EUP slot)
    q = jnp.dot(cbt_ref[...], p, preferred_element_type=jnp.float32)
    q_ref[...] = q.astype(q_ref.dtype)

    # KL(uniform || clamp(p, 1e-6)) partial sum for this tile, reusing the
    # softmax internals: log p = (logits - m) - log(se), and
    # log(max(p, 1e-6)) == max(log p, log 1e-6).
    log_p_cl = jnp.maximum((logits - m) - jnp.log(se), min_log_p)
    n_elems = logits.shape[0] * logits.shape[1]
    kl_tile = target_prob * (n_elems * log_target - jnp.sum(log_p_cl))
    kl_ref[...] = kl_tile.reshape(1, 1)


def _pick_spatial_tile(hw, c, f, bytes_per_step):
    """Largest lane tile (multiple of 128 dividing hw) within a byte budget."""
    per_col = 4 * (2 * c + f)                    # x + gumbel + q columns, f32
    cap = max(128, (bytes_per_step // per_col) // 128 * 128)
    if hw <= cap or hw % 128 != 0:
        # Single spatial tile per batch element (a block dim equal to the full
        # array dim is always a legal block shape).
        return hw
    best = 128
    for t in range(128, cap + 1, 128):
        if hw % t == 0:
            best = t
    return best


def vq_gumbel_forward(x, codebook, gumbel, *, normalized_length=1.0, tau=1.0,
                      hard=True, loss_weight=1.0, bytes_per_step=3 << 20):
    """x: (B, C, H, W) NCHW with C == codebook_size; codebook: (C, F);
    gumbel: (B, C, H*W) gumbel noise laid out channel-major like the kernel.

    Returns (q, loss): q is (B, F, H, W) NCHW and loss the scalar
    loss_weight * KL(uniform || clamp(p, 1e-6)) with reduction='batchmean',
    matching VQGumbel.forward's return value and its `self.loss` side effect.
    """
    B, C, H, W = x.shape
    K, F = codebook.shape
    assert K == C, "codebook_size must equal the channel dim of x"
    HW = H * W
    assert gumbel.shape == (B, C, HW)

    xf = x.reshape(B, C, HW)                       # free view of NCHW
    cbt = jnp.asarray(codebook, jnp.float32).T     # (F, C): tiny one-off transpose

    tn = _pick_spatial_tile(HW, C, F, bytes_per_step)
    n_t = HW // tn
    # TODO(synk): remainder masking for HW not divisible by the chosen tile is
    # not needed here (such shapes fall back to a single full-extent tile).

    grid = (B, n_t)
    x_spec = pl.BlockSpec((None, C, tn), lambda b, t: (b, 0, t))
    g_spec = pl.BlockSpec((None, C, tn), lambda b, t: (b, 0, t))
    cb_spec = pl.BlockSpec((F, C), lambda b, t: (0, 0))        # resident
    q_spec = pl.BlockSpec((None, F, tn), lambda b, t: (b, 0, t))
    cparams = pltpu.CompilerParams(
        dimension_semantics=("parallel", "parallel"))

    if hard:
        kernel = functools.partial(
            _vq_gumbel_hard_kernel,
            normalized_length=float(normalized_length))
        q_flat = pl.pallas_call(
            kernel,
            out_shape=jax.ShapeDtypeStruct((B, F, HW), jnp.float32),
            grid_spec=pltpu.PrefetchScalarGridSpec(
                num_scalar_prefetch=0, grid=grid,
                in_specs=[x_spec, g_spec, cb_spec],
                out_specs=q_spec),
            compiler_params=cparams,
        )(xf, gumbel, cbt)
        # KL(uniform || clamp(one_hot, 1e-6)) is data-independent for the hard
        # straight-through forward -> trace-time constant (no in-kernel work).
        t_p = 1.0 / C
        per_row_kl = t_p * (C * math.log(t_p) - (C - 1) * math.log(1e-6))
        loss = jnp.float32(float(loss_weight) * per_row_kl)
    else:
        kernel = functools.partial(
            _vq_gumbel_soft_kernel,
            normalized_length=float(normalized_length),
            inv_tau=1.0 / float(tau),
            target_prob=1.0 / C,
            log_target=math.log(1.0 / C),
            min_log_p=math.log(1e-6))
        q_flat, kl_parts = pl.pallas_call(
            kernel,
            out_shape=(jax.ShapeDtypeStruct((B, F, HW), jnp.float32),
                       jax.ShapeDtypeStruct((B, n_t, 1, 1), jnp.float32)),
            grid_spec=pltpu.PrefetchScalarGridSpec(
                num_scalar_prefetch=0, grid=grid,
                in_specs=[x_spec, g_spec, cb_spec],
                out_specs=(q_spec,
                           pl.BlockSpec((None, None, 1, 1),
                                        lambda b, t: (b, t, 0, 0)))),
            compiler_params=cparams,
        )(xf, gumbel, cbt)
        loss = (float(loss_weight) / (B * HW)) * jnp.sum(kl_parts)

    return q_flat.reshape(B, F, H, W), loss


def _reference_forward(x, codebook, gumbel, *, normalized_length, tau, hard,
                       loss_weight):
    B, C, H, W = x.shape
    s = jnp.sum(x * x, axis=1, keepdims=True)
    xn = (normalized_length * x) * lax.rsqrt(jnp.maximum(s, 1e-24))
    z = xn.reshape(B, C, H * W)
    logits = (z + gumbel) / tau
    soft = jax.nn.softmax(logits, axis=1)
    if hard:
        p = jax.nn.one_hot(jnp.argmax(soft, axis=1), C, axis=1,
                           dtype=jnp.float32)
    else:
        p = soft
    q = jnp.einsum('cf,bcn->bfn', codebook, p,
                   precision=jax.lax.Precision.HIGHEST).reshape(B, -1, H, W)
    p_cl = jnp.maximum(p, 1e-6)
    t = 1.0 / C
    loss = (loss_weight *
            jnp.sum(t * (jnp.log(t) - jnp.log(p_cl))) / (B * H * W))
    return q, loss


if __name__ == "__main__":
    # module hyper-params
    normalized_length = 2.0
    codebook_size = 8            # == channel dim of x
    feature_size = 32
    temperature = 1.0
    loss_weight = 0.5

    B, C, H, W = 2, codebook_size, 16, 16

    key = jax.random.PRNGKey(0)
    kx, kcb, kg = jax.random.split(key, 3)
    x = jax.random.normal(kx, (B, C, H, W), dtype=jnp.float32)
    codebook = jax.random.normal(kcb, (codebook_size, feature_size),
                                 dtype=jnp.float32)
    # TODO(synk): gumbel noise sampled host-side with jax.random rather than
    # the in-kernel PRNG; same distribution as torch F.gumbel_softmax.
    gumbel = jax.random.gumbel(kg, (B, C, H * W), dtype=jnp.float32)

    # hard (straight-through) path -- the module's default configuration.
    q, loss = vq_gumbel_forward(
        x, codebook, gumbel, normalized_length=normalized_length,
        tau=temperature, hard=True, loss_weight=loss_weight)
    jax.block_until_ready((q, loss))
    q_ref, loss_ref = _reference_forward(
        x, codebook, gumbel, normalized_length=normalized_length,
        tau=temperature, hard=True, loss_weight=loss_weight)
    assert q.shape == (B, feature_size, H, W)
    assert jnp.allclose(q, q_ref, atol=1e-5, rtol=1e-5)
    assert jnp.allclose(loss, loss_ref, atol=1e-5, rtol=1e-5)

    # soft path (hard=False) with a non-trivial (exactly representable) tau.
    q_s, loss_s = vq_gumbel_forward(
        x, codebook, gumbel, normalized_length=normalized_length,
        tau=2.0, hard=False, loss_weight=loss_weight)
    jax.block_until_ready((q_s, loss_s))
    q_s_ref, loss_s_ref = _reference_forward(
        x, codebook, gumbel, normalized_length=normalized_length,
        tau=2.0, hard=False, loss_weight=loss_weight)
    assert jnp.allclose(q_s, q_s_ref, atol=1e-5, rtol=1e-5)
    assert jnp.allclose(loss_s, loss_s_ref, atol=1e-5, rtol=1e-5)

    print("KERNEL_OK")
</pallas_src>

<mosaic_0001>
module attributes {stable_mosaic.version = 11 : i64} {
  func.func @_vq_gumbel_hard_kernel(%arg0: i32, %arg1: i32, %arg2: memref<1x8x256xf32, #tpu.memory_space<vmem>>, %arg3: memref<1x8x256xf32, #tpu.memory_space<vmem>>, %arg4: memref<32x8xf32, #tpu.memory_space<vmem>>, %arg5: memref<1x32x256xf32, #tpu.memory_space<vmem>>) attributes {dimension_semantics = [#tpu.dimension_semantics<parallel>, #tpu.dimension_semantics<parallel>], iteration_bounds = array<i64: 2, 1>, scalar_prefetch = 0 : i64, scratch_operands = 0 : i64, tpu.core_type = #tpu.core_type<tc>, window_params = [{transform_indices = @transform_0, window_bounds = array<i64: 1, 8, 256>}, {transform_indices = @transform_1, window_bounds = array<i64: 1, 8, 256>}, {pipeline_mode = #tpu.pipeline_mode<synchronous>, transform_indices = @transform_2, window_bounds = array<i64: 32, 8>}, {transform_indices = @transform_3, window_bounds = array<i64: 1, 32, 256>}]} {
    %c0 = arith.constant 0 : index
    %c0_0 = arith.constant 0 : index
    %c0_1 = arith.constant 0 : index
    %0 = vector.load %arg2[%c0, %c0_0, %c0_1] : memref<1x8x256xf32, #tpu.memory_space<vmem>>, vector<1x8x256xf32>
    %1 = vector.shape_cast %0 : vector<1x8x256xf32> to vector<8x256xf32>
    %c0_2 = arith.constant 0 : index
    %c0_3 = arith.constant 0 : index
    %c0_4 = arith.constant 0 : index
    %2 = vector.load %arg3[%c0_2, %c0_3, %c0_4] : memref<1x8x256xf32, #tpu.memory_space<vmem>>, vector<1x8x256xf32>
    %3 = vector.shape_cast %2 : vector<1x8x256xf32> to vector<8x256xf32>
    %4 = arith.mulf %1, %1 : vector<8x256xf32>
    %cst = arith.constant dense<0.000000e+00> : vector<256xf32>
    %5 = vector.multi_reduction <add>, %4, %cst [0] : vector<8x256xf32> to vector<256xf32>
    %6 = vector.shape_cast %5 : vector<256xf32> to vector<1x256xf32>
    %cst_5 = arith.constant 2.000000e+00 : f32
    %7 = vector.broadcast %cst_5 : f32 to vector<8x256xf32>
    %8 = arith.mulf %7, %1 : vector<8x256xf32>
    %cst_6 = arith.constant 1.000000e-24 : f32
    %9 = vector.broadcast %cst_6 : f32 to vector<1x256xf32>
    %10 = arith.maximumf %6, %9 : vector<1x256xf32>
    %11 = math.rsqrt %10 : vector<1x256xf32>
    %12 = vector.broadcast %11 : vector<1x256xf32> to vector<8x256xf32>
    %13 = arith.mulf %8, %12 : vector<8x256xf32>
    %14 = arith.addf %13, %3 : vector<8x256xf32>
    %cst_7 = arith.constant dense<0xFF800000> : vector<256xf32>
    %15 = vector.multi_reduction <maximumf>, %14, %cst_7 [0] : vector<8x256xf32> to vector<256xf32>
    %16 = vector.shape_cast %15 : vector<256xf32> to vector<1x256xf32>
    %17 = tpu.iota {dimensions = array<i32: 0>} : vector<8x256xi32>
    %18 = vector.broadcast %16 : vector<1x256xf32> to vector<8x256xf32>
    %19 = arith.cmpf oeq, %14, %18 : vector<8x256xf32>
    %c8_i32 = arith.constant 8 : i32
    %20 = vector.broadcast %c8_i32 : i32 to vector<8x256xi32>
    %21 = arith.select %19, %17, %20 : vector<8x256xi1>, vector<8x256xi32>
    %cst_8 = arith.constant dense<2147483647> : vector<256xi32>
    %22 = vector.multi_reduction <minsi>, %21, %cst_8 [0] : vector<8x256xi32> to vector<256xi32>
    %23 = vector.shape_cast %22 : vector<256xi32> to vector<1x256xi32>
    %24 = vector.broadcast %23 : vector<1x256xi32> to vector<8x256xi32>
    %25 = arith.cmpi eq, %17, %24 : vector<8x256xi32>
    %26 = arith.extui %25 : vector<8x256xi1> to vector<8x256xi32>
    %27 = arith.sitofp %26 : vector<8x256xi32> to vector<8x256xf32>
    %c0_9 = arith.constant 0 : index
    %c0_10 = arith.constant 0 : index
    %28 = vector.load %arg4[%c0_9, %c0_10] : memref<32x8xf32, #tpu.memory_space<vmem>>, vector<32x8xf32>
    %cst_11 = arith.constant dense<0.000000e+00> : vector<32x256xf32>
    %29 = tpu.matmul %28, %27, %cst_11 {dimension_numbers = #tpu.dot_dimension_numbers<[1], [0], [0], [1], [0, 0, 1, 1], [], []>} : vector<32x8xf32>, vector<8x256xf32>, vector<32x256xf32> -> vector<32x256xf32>
    %c0_12 = arith.constant 0 : index
    %c0_13 = arith.constant 0 : index
    %c0_14 = arith.constant 0 : index
    %30 = vector.load %arg5[%c0_12, %c0_13, %c0_14] : memref<1x32x256xf32, #tpu.memory_space<vmem>>, vector<1x32x256xf32>
    %31 = vector.shape_cast %30 : vector<1x32x256xf32> to vector<32x256xf32>
    %32 = vector.shape_cast %29 : vector<32x256xf32> to vector<1x32x256xf32>
    tpu.vector_store %arg5[%c0_12, %c0_13, %c0_14], %32 {strides = array<i32>} : memref<1x32x256xf32, #tpu.memory_space<vmem>>, vector<1x32x256xf32>,
    return
  }
  func.func @transform_0(%arg0: i32, %arg1: i32) -> (i32, i32, i32) {
    %c0_i32 = arith.constant 0 : i32
    %c0_i32_0 = arith.constant 0 : i32
    return %arg0, %c0_i32, %arg1 : i32, i32, i32
  }
  func.func @transform_1(%arg0: i32, %arg1: i32) -> (i32, i32, i32) {
    %c0_i32 = arith.constant 0 : i32
    %c0_i32_0 = arith.constant 0 : i32
    return %arg0, %c0_i32, %arg1 : i32, i32, i32
  }
  func.func @transform_2(%arg0: i32, %arg1: i32) -> (i32, i32) {
    %c0_i32 = arith.constant 0 : i32
    %c0_i32_0 = arith.constant 0 : i32
    %c0_i32_1 = arith.constant 0 : i32
    return %c0_i32, %c0_i32_0 : i32, i32
  }
  func.func @transform_3(%arg0: i32, %arg1: i32) -> (i32, i32, i32) {
    %c0_i32 = arith.constant 0 : i32
    %c0_i32_0 = arith.constant 0 : i32
    return %arg0, %c0_i32, %arg1 : i32, i32, i32
  }
}

</mosaic_0001>

<bundles_post_ra>
// kernel: tpu_custom_call.1
= control target key start
LH: loop header
LB: loop body
LE: loop exit
PB: predicated region body
PF: predicated region fallthrough
CT: control target
= control target key end

     0   :  { %8 = vsyncpa [#allocation3], 0  ;;  %s988_s0 = inlined_call_operand.vmem [shape: f32[2,8,256], index: 0, kind: input, shape index: {}]   ;;  %s989_s1 = inlined_call_operand.hbm [shape: f32[2,8,256], index: 1, kind: input, shape index: {}]   ;;  %s990_s2 = inlined_call_operand.vmem [shape: f32[32,8], index: 2, kind: input, shape index: {}]   ;;  %s991_s3 = inlined_call_operand.hbm [shape: f32[2,32,256], index: 3, kind: output, shape index: {}]  }
   0x1   :  { %10 = vsyncpa [#allocation3 + $0x1], 0 }
   0x2   :  { %11 = vsyncpa [#allocation4], 0 }
   0x3   :  { %13 = vsyncpa [#allocation4 + $0x1], 0  ;;  %s788_s12 = smov 0   ;;  %s790_s13 = smov 0  }
   0x4   :  { %s792_s14 = smov 0   ;;  %s794_s15 = smov 0  }
   0x5   :  { %s796_s16 = smov 0   ;;  %s798_s17 = smov 0  }
   0x6 LB: > { %s548_s18 = sadd.s32 4294967295, %s760_s17   ;;  %s549_s19 = sadd.s32 4294967294, %s760_s17   ;;  %s760_s17 = sphi %s798_s17, %s19_s17   ;;  %s756_s16 = sphi %s796_s16, %s1007_s16   ;;  %s752_s15 = sphi %s794_s15, %s1006_s15   ;;  %s748_s14 = sphi %s792_s14, %s1005_s14   ;;  %s744_s13 = sphi %s790_s13, %s1004_s13   ;;  %s740_s12 = sphi %s788_s12, %s1003_s12  }
   0x7   : > { %s31_s20 = sadd.s32 1, %s756_s16  ;;  %s68_s21 = sadd.s32 1, %s748_s14 }
   0x8   : > { %p33_p0 = scmp.ge.s32.totalorder %s31_s20, 2  ;;  %p75_p1 = scmp.ne.s32.totalorder %s748_s14, %s744_s13 }
   0x9   : > { %p76_p2 = scmp.eq.s32.totalorder %s760_s17, 0  ;;  %p81_p3 = scmp.ne.s32.totalorder %s744_s13, %s740_s12 }
   0xa   : > { %s1009_s20 = smov (%p33_p0, %s31_s20), 0  ;;  %p82_p5 = scmp.eq.s32.totalorder %s548_s18, 0 }
   0xb   : > { %p829_p4 = por %p76_p2, %p75_p1  ;;  %s63_s23 = ssub.s32 %s756_s16, %s1009_s20 }
   0xc   : > { %p128_p6 = scmp.eq.s32.totalorder %s548_s18, 1  ;;  %p66_p7 = scmp.eq.s32.totalorder %s63_s23, 0 }
   0xd   : > { %p835_p8 = por %p82_p5, %p81_p3  ;;  %p134_p10 = scmp.eq.s32.totalorder %s549_s19, 1 }
   0xe   : > { %p839_p9 = por %p128_p6, %p75_p1  ;;  %p590_p13 = scmp.lt.s32.totalorder %s760_s17, 2 }
   0xf   : > { %s844_s26 = scalar_select %p66_p7, %s748_s14, %s68_s21  }
  0x10   : > { %s995_s25 = scalar_select %p839_p9, 1, 0 }
  0x11   : > { %p846_p11 = por %p134_p10, %p81_p3  ;;  %s170_s28 = sand.u32 1, %s748_s14  }
  0x12   : > { %s552_s29 = sshll.u32 %s170_s28, 4  ;;  %s573_s30 = sshll.u32 %s756_s16, 8 }
  0x13   : > { %s996_s27 = scalar_select %p846_p11, 1, 0 }
  0x14   : > { %s857_s6 = scalar_lea.hbm %s989_s1, %s573_s30  ;;  %s174_s7 = scalar_lea.vmem [#allocation2], %s552_s29 }
  0x15   : > { %s184_s8 = sshll.u32 %s174_s7, 4  ;;  %p863_p0 = pnand %p590_p13, %p829_p4  ;;  %s859_s8 = int_to_ptr.vmem [resolvable:$true] %s184_s8 }
  0x16   : > { %s171_s10 = scalar_lea.sflag [#allocation3], %s170_s28  ;;  %s648_s11 = scalar_lea.hbm %s857_s6, 256 }
  0x17   : > { %p649_p3 = scmp.ne.s32.totalorder %s857_s6, %s648_s11  ;;  %p650_p5 = pneg %p863_p0 }
  0x18   : > { %s653_s21 = scalar_lea.hbm %s989_s1, 512  ;;  %p654_p4 = scmp.lt.u32.totalorder %s857_s6, %s989_s1 }
  0x19   : > { %p651_p6 = pnand %p650_p5, %p649_p3  ;;  %p655_p10 = scmp.lt.u32.totalorder %s653_s21, %s648_s11 }
  0x1a   : > { %p657_p12 = scmp.lt.u32.totalorder %s648_s11, %s857_s6 }
  0x1b   : > { %p652_p7 = pneg %p651_p6  ;;  %p656_p13 = por %p655_p10, %p654_p4 }
  0x1d   : > { %p658_p1 = por %p657_p12, %p656_p13 }
  0x1f   : > { %p659_p2 = pnand %p658_p1, %p652_p7 }
  0x21   : > { %662 = shalt.err (!%p659_p2)
}
  0x22   : > { %s663_s28 = scalar_lea.vmem %s859_s8, 256  ;;  %s762_s29 = smov [#allocation2]  }
  0x23   : > { %p664_p3 = scmp.ne.s32.totalorder %s859_s8, %s663_s28  ;;  %s668_s30 = sshll.u32 %s762_s29, 4  ;;  %s669_s30 = int_to_ptr.vmem [resolvable:$false] %s668_s30 }
  0x24   : > { %s670_s4 = scalar_lea.vmem %s669_s30, 512  ;;  %p671_p9 = scmp.lt.s32.totalorder %s859_s8, %s669_s30 }
  0x25   : > { %p666_p6 = pnand %p664_p3, %p650_p5  ;;  %p672_p4 = scmp.lt.s32.totalorder %s670_s4, %s663_s28 }
  0x27   : > { %p667_p11 = pneg %p666_p6  ;;  %p673_p10 = por %p672_p4, %p671_p9 }
  0x29   : > { %p674_p12 = pnand %p673_p10, %p667_p11 }
  0x2b   : > { %677 = shalt.err (!%p674_p12)
}
  0x2c   : > { %585 = dma.hbm_to_vmem [thread:$0]  (!%p863_p0), %s857_s6, 256, %s859_s8, %s171_s10  }
  0x2d   : > { %p998_p1 = scmp.lt.s32.totalorder %s760_s17, 3  ;;  %p999_p2 = scmp.ge.s32.totalorder %s760_s17, 1 }
  0x2f   : > { %p190_p5 = pnand %p999_p2, %p998_p1 }
  0x30   : > { %s899_s5 = sand.u32 (!%p190_p5), 1, %s744_s13  }
  0x31   : > { %193 = sbr.rel (%p190_p5) target bundleno = 356 (0x164), region = 32  ;;  %s556_s7 = sshll.u32 (!%p190_p5), %s899_s5, 4 }
  0x32   : > { %s196_s11 = scalar_lea.sflag (!%p190_p5), [#allocation3], %s899_s5  ;;  %s903_s18 = scalar_lea.vmem (!%p190_p5), [#allocation2], %s556_s7 }
  0x38   : > { %731 = dma.done.wait (%p835_p8), %s196_s11, 256  }
  0x39   : > { %733 = vsyncadd (%p835_p8), %s196_s11, 4294967040  ;;  %p232_p9 = scmp.lt.s32.totalorder %s752_s15, 1  ;;  %v763_v0 = vmov 0.0   ;;  %v246_v22 = vld [vmem:[%s903_s18 + $0x8] sm:$0xff]  ;;  %v245_v25 = vld [vmem:[%s903_s18] sm:$0xff]  ;;  %v283_v34 = vlaneseq  ;;  %vm317_vm9 = vcmask 64512  }
  0x3a   : > { %394 = vmatprep.mubr.f32.mxu0 %v763_v0  ;;  %406 = vmatprep.mubr.f32.mxu1 %v763_v0  ;;  %v313_v57 = vld [vmem:[%s990_s2] sm:$0xff]  ;;  %v315_v58 = vld [vmem:[%s990_s2 + $0x10] sm:$0xff]  ;;  %v764_v59 = vmov 1.0   ;;  %v314_v60 = vld [vmem:[%s990_s2 + $0x8] sm:$0xff]  ;;  %s557_s7 = sshll.u32 %s899_s5, 6  ;;  %p1000_p11 = scmp.ne.s32.totalorder %s995_s25, 0 }
  0x3b   : > { %s233_s6 = scalar_select %p232_p9, %s752_s15, 1  ;;  %v284_v39 = vshrl.u32 %v283_v34, 7  ;;  %v316_v61 = vld [vmem:[%s990_s2 + $0x18] sm:$0xff] }
  0x3c   : > { %s230_s11 = scalar_lea.vmem [#allocation5], %s557_s7  ;;  %s765_s24 = smov [#allocation5]  }
  0x3d   : > { %s574_s8 = sshll.u32 %s233_s6, 4  ;;  %s443_s18 = sshll.u32 %s230_s11, 4  ;;  %s934_s18 = int_to_ptr.vmem [resolvable:$true] %s443_s18 }
  0x3e   : > { %s239_s19 = scalar_lea.vmem %s988_s0, %s574_s8  ;;  %s575_s6 = sshll.u32 %s752_s15, 10 }
  0x3f   : > { %v244_v1 = vld [vmem:[%s239_s19 + $0x8] sm:$0xff]  ;;  %v243_v2 = vld [vmem:[%s239_s19] sm:$0xff]  ;;  %s939_s10 = scalar_lea.hbm %s991_s3, %s575_s6  ;;  %s428_s15 = scalar_lea.sflag [#allocation4], %s899_s5 }
  0x40   : > { %v248_v3 = vmul.f32 %v244_v1, %v244_v1  ;;  %v247_v4 = vmul.f32 %v243_v2, %v243_v2  ;;  %v262_v19 = vmul.f32 2.0, %v244_v1  ;;  %v261_v20 = vmul.f32 2.0, %v243_v2  ;;  %s678_s19 = scalar_lea.vmem %s934_s18, 1024  ;;  %s682_s21 = sshll.u32 %s765_s24, 4  ;;  %s683_s21 = int_to_ptr.vmem [resolvable:$false] %s682_s21 }
  0x41   : > { %p679_p8 = scmp.ne.s32.totalorder %s934_s18, %s678_s19  ;;  %s684_s22 = scalar_lea.vmem %s683_s21, 2048 }
  0x42   : > { %v255_v5 = vrot.slane %v248_v3, 4  ;;  %v249_v6 = vrot.slane %v247_v4, 4  ;;  %p685_p13 = scmp.lt.s32.totalorder %s934_s18, %s683_s21  ;;  %p686_p3 = scmp.lt.s32.totalorder %s684_s22, %s678_s19 }
  0x43   : > { %p680_p0 = pnand %p679_p8, %p1000_p11 }
  0x44   : > { %v256_v7 = vadd.f32 %v255_v5, %v248_v3  ;;  %v250_v8 = vadd.f32 %v249_v6, %v247_v4  ;;  %p687_p6 = por %p686_p3, %p685_p13 }
  0x45   : > { %p681_p7 = pneg %p680_p0 }
  0x46   : > { %v257_v9 = vrot.slane %v256_v7, 2  ;;  %v251_v10 = vrot.slane %v250_v8, 2 }
  0x47   : > { %p688_p4 = pnand %p687_p6, %p681_p7 }
  0x48   : > { %v258_v11 = vadd.f32 %v257_v9, %v256_v7  ;;  %v252_v12 = vadd.f32 %v251_v10, %v250_v8 }
  0x4a   : > { %v259_v13 = vrot.slane %v258_v11, 1  ;;  %v253_v14 = vrot.slane %v252_v12, 1 }
  0x4c   : > { %v260_v15 = vadd.f32 %v259_v13, %v258_v11  ;;  %v254_v16 = vadd.f32 %v253_v14, %v252_v12 }
  0x4e   : > { %v264_v17 = vmax.f32 %v260_v15, 1e-24  ;;  %v263_v18 = vmax.f32 %v254_v16, 1e-24 }
  0x50   : > { %644 = vrsqrt.f32 %v264_v17 }
  0x51   : > { %646 = vrsqrt.f32 %v263_v18 }
  0x5a   : > { %v645_v21 = vpop.eup %644 }
  0x5b   : > { %v647_v23 = vpop.eup %646  ;;  %v268_v24 = vmul.f32 %v645_v21, %v262_v19 }
  0x5c   : > { %v267_v26 = vmul.f32 %v647_v23, %v261_v20 }
  0x5d   : > { %v270_v27 = vadd.f32 %v268_v24, %v246_v22 }
  0x5e   : > { %v269_v28 = vadd.f32 %v267_v26, %v245_v25 }
  0x5f   : > { %v277_v29 = vrot.slane %v270_v27, 4 }
  0x60   : > { %v271_v30 = vrot.slane %v269_v28, 4 }
  0x61   : > { %v278_v31 = vmax.f32 %v270_v27, %v277_v29 }
  0x62   : > { %v272_v32 = vmax.f32 %v269_v28, %v271_v30 }
  0x63   : > { %v279_v33 = vrot.slane %v278_v31, 2 }
  0x64   : > { %v273_v35 = vrot.slane %v272_v32, 2 }
  0x65   : > { %v280_v36 = vmax.f32 %v278_v31, %v279_v33 }
  0x66   : > { %v274_v37 = vmax.f32 %v272_v32, %v273_v35 }
  0x67   : > { %v281_v38 = vrot.slane %v280_v36, 1 }
  0x68   : > { %v275_v40 = vrot.slane %v274_v37, 1 }
  0x69   : > { %v282_v41 = vmax.f32 %v280_v36, %v281_v38 }
  0x6a   : > { %v276_v42 = vmax.f32 %v274_v37, %v275_v40 }
  0x6b   : > { %vm286_vm0 = vcmp.eq.f32.partialorder %v270_v27, %v282_v41 }
  0x6c   : > { %v288_v43 = vsel %vm286_vm0, %v284_v39, 8  ;;  %vm285_vm1 = vcmp.eq.f32.partialorder %v269_v28, %v276_v42 }
  0x6d   : > { %v298_v44 = vrot.slane %v288_v43, 4  ;;  %v287_v45 = vsel %vm285_vm1, %v284_v39, 8 }
  0x6e   : > { %v289_v46 = vrot.slane %v287_v45, 4 }
  0x6f   : > { %vm299_vm2 = vcmp.lt.s32.totalorder %v288_v43, %v298_v44 }
  0x70   : > { %v300_v47 = vsel %vm299_vm2, %v288_v43, %v298_v44  ;;  %vm290_vm3 = vcmp.lt.s32.totalorder %v287_v45, %v289_v46 }
  0x71   : > { %v301_v48 = vrot.slane %v300_v47, 2  ;;  %v291_v49 = vsel %vm290_vm3, %v287_v45, %v289_v46 }
  0x72   : > { %v292_v50 = vrot.slane %v291_v49, 2 }
  0x73   : > { %vm302_vm4 = vcmp.lt.s32.totalorder %v300_v47, %v301_v48 }
  0x74   : > { %v303_v51 = vsel %vm302_vm4, %v300_v47, %v301_v48  ;;  %vm293_vm5 = vcmp.lt.s32.totalorder %v291_v49, %v292_v50 }
  0x75   : > { %v304_v52 = vrot.slane %v303_v51, 1  ;;  %v294_v53 = vsel %vm293_vm5, %v291_v49, %v292_v50 }
  0x76   : > { %v295_v54 = vrot.slane %v294_v53, 1 }
  0x77   : > { %vm305_vm6 = vcmp.lt.s32.totalorder %v303_v51, %v304_v52 }
  0x78   : > { %v306_v55 = vsel %vm305_vm6, %v303_v51, %v304_v52  ;;  %vm296_vm7 = vcmp.lt.s32.totalorder %v294_v53, %v295_v54 }
  0x79   : > { %vm308_vm8 = vcmp.eq.s32.totalorder %v284_v39, %v306_v55  ;;  %v297_v56 = vsel %vm296_vm7, %v294_v53, %v295_v54 }
  0x7a   : > { %562 = vmatprep.subr.msk.mxu0 %vm308_vm8, %v764_v59  ;;  %576 = vmatprep.subr.msk.mxu1 %vm308_vm8, %v764_v59  ;;  %vm307_vm10 = vcmp.eq.s32.totalorder %v284_v39, %v297_v56 }
  0x7b   : > { %563 = vmatpush1.msk.msra.mxu0 %vm307_vm10, %v764_v59  ;;  %577 = vmatpush1.msk.msra.mxu1 %vm307_vm10, %v764_v59 }
  0x7c   : > { %564 = vmatmul.mubr.msk.f32.vlgmr.msra.gmra.mrb[0].mxu0 %vm317_vm9, %v313_v57  ;;  %566 = vmatmul.mubr.msk.f32.vlgmr.msra.gmra.mrb[0].mxu1 %vm317_vm9, %v315_v58 }
  0x7d   : > { %400 = vmatprep.mubr.f32.mxu0 %v763_v0  ;;  %412 = vmatprep.mubr.f32.mxu1 %v763_v0 }
  0x80   : > { %565 = vmatmul.mubr.msk.f32.gmra.mrb[2].mxu0 %vm317_vm9, %v314_v60  ;;  %567 = vmatmul.mubr.msk.f32.gmra.mrb[2].mxu1 %vm317_vm9, %v316_v61 }
 0x14f   : > { %v396_v62 = vpop.f32.mrb[0].mxu0  ;;  %v408_v63 = vpop.f32.mrb[0].mxu1 }
 0x150   : > { %419 = vst [vmem:[%s230_s11] sm:$0xff] %v396_v62  ;;  %423 = vst [vmem:[%s230_s11 + $0x20] sm:$0xff] %v408_v63  ;;  %v398_v0 = vpop.f32.mrb[1].mxu0  ;;  %v410_v1 = vpop.f32.mrb[1].mxu1 }
 0x151   : > { %420 = vst [vmem:[%s230_s11 + $0x8] sm:$0xff] %v398_v0  ;;  %424 = vst [vmem:[%s230_s11 + $0x28] sm:$0xff] %v410_v1 }
 0x153   : > { %v402_v2 = vpop.f32.mrb[2].mxu0  ;;  %v414_v3 = vpop.f32.mrb[2].mxu1 }
 0x154   : > { %421 = vst [vmem:[%s230_s11 + $0x10] sm:$0xff] %v402_v2  ;;  %425 = vst [vmem:[%s230_s11 + $0x30] sm:$0xff] %v414_v3  ;;  %v404_v4 = vpop.f32.mrb[3].mxu0  ;;  %v416_v5 = vpop.f32.mrb[3].mxu1 }
 0x155   : > { %422 = vst [vmem:[%s230_s11 + $0x18] sm:$0xff] %v404_v4  ;;  %426 = vst [vmem:[%s230_s11 + $0x38] sm:$0xff] %v416_v5 }
 0x156   : > { %691 = shalt.err (!%p688_p4)
}
 0x157   : > { %s692_s23 = scalar_lea.hbm %s939_s10, 1024  ;;  %s696_s30 = scalar_lea.hbm %s991_s3, 2048 }
 0x158   : > { %p693_p10 = scmp.ne.s32.totalorder %s939_s10, %s692_s23  ;;  %p697_p2 = scmp.lt.u32.totalorder %s939_s10, %s991_s3 }
 0x159   : > { %p698_p5 = scmp.lt.u32.totalorder %s696_s30, %s692_s23  ;;  %p700_p8 = scmp.lt.u32.totalorder %s692_s23, %s939_s10 }
 0x15a   : > { %p694_p12 = pnand %p693_p10, %p1000_p11 }
 0x15b   : > { %p699_p9 = por %p698_p5, %p697_p2 }
 0x15c   : > { %p695_p1 = pneg %p694_p12 }
 0x15d   : > { %p701_p0 = por %p700_p8, %p699_p9 }
 0x15f   : > { %p702_p7 = pnand %p701_p0, %p695_p1 }
 0x161   : > { %705 = shalt.err (!%p702_p7)
}
 0x162   : > { %s766_s11 = smov 256   ;;  %s767_s6 = smov 16  }
 0x163   : > { %580 = dma.vmem_to_hbm [thread:$0]  (%p1000_p11), %s934_s18, 1024, %s939_s10, %s428_s15, %s766_s11, %s766_s11, %s767_s6  }
 0x164 PF: > { %s458_s8 = sand.u32 1, %s740_s12   ;;  %p1001_p13 = scmp.ne.s32.totalorder %s996_s27, 0 }
 0x165   : > { %p1002_p3 = scmp.ge.s32.totalorder %s760_s17, 2  ;;  %s459_s9 = scalar_lea.sflag [#allocation4], %s458_s8 }
 0x167   : > { %p587_p6 = pnand %p1002_p3, %p1001_p13 }
 0x169   : > { %735 = dma.done.wait (!%p587_p6), %s459_s9, 1024  }
 0x16a   : > { %737 = vsyncadd (!%p587_p6), %s459_s9, 4294966272  ;;  %s19_s17 = sadd.s32 1, %s760_s17   ;;  %s1003_s12 = smov %s744_s13 }
 0x16b   : > { %p16_p4 = scmp.ge.s32.totalorder %s19_s17, 4   ;;  %s1004_s13 = smov %s748_s14 }
 0x16c   : > { %s1005_s14 = smov %s844_s26  ;;  %s1006_s15 = smov %s756_s16 }
 0x16d   : > { %s1007_s16 = smov %s1009_s20  ;;  %18 = sbr.rel (!%p16_p4) target bundleno = 6 (0x6), region = 80 }
 0x174   :  { %464 = vsyncpa [#allocation3], 1 }
 0x175   :  { %466 = vsyncpa [#allocation3 + $0x1], 1 }
 0x176   :  { %467 = vsyncpa [#allocation4], 1 }
 0x177   :  { %469 = vsyncpa [#allocation4 + $0x1], 1 }

</bundles_post_ra>
